<compile_context>
chip_gen: v6e
topology: v6e:2x2x1
jax: 0.10.0
libtpu: 0.0.40
codegen_flags: <defaults>
</compile_context>

<pallas_src>
import functools

import jax
import jax.numpy as jnp
from jax import lax
from jax.experimental import pallas as pl
from jax.experimental.pallas import tpu as pltpu

_LANES = 128


def _round_up(n, m):
    return ((n + m - 1) // m) * m


def _make_kernel(H, T):
    """Fused RNN(tanh) + Linear kernel, specialized to B=1, I=1, O=1."""

    def kernel(x_ref, h0_ref, slab_ref, out_ref):
        # x_ref:    (T,) f32 SMEM      per-step scalar inputs
        # h0_ref:   (1, H) f32 VMEM    initial hidden state (row form)
        # slab_ref: (R, 128) f32 VMEM  packed constant parameters (see prepare_params)
        # out_ref:  (8, 128) f32 VMEM  row 0 = y over lanes 0..T-1, row 1 = h_T over lanes 0..H-1

        # --- static slices of the packed parameter slab (views, no per-call prep) ---
        whh_jk  = slab_ref[0:H, 0:H]                    # (H, H)  [j, k] = W_hh[j, k]
        whh_kj  = slab_ref[H:2 * H, 0:H]                # (H, H)  [k, j] = W_hh[j, k]
        wih_col = slab_ref[2 * H:3 * H, 0:1]            # (H, 1)
        b_col   = slab_ref[3 * H:4 * H, 0:1]            # (H, 1)  b_ih + b_hh
        wl_col  = slab_ref[4 * H:5 * H, 0:1]            # (H, 1)
        wih_row = slab_ref[5 * H + 0:5 * H + 1, 0:H]    # (1, H)
        b_row   = slab_ref[5 * H + 1:5 * H + 2, 0:H]    # (1, H)
        wl_row  = slab_ref[5 * H + 2:5 * H + 3, 0:H]    # (1, H)
        b_l     = slab_ref[5 * H + 3:5 * H + 4, 0:1]    # (1, 1)

        lane = lax.broadcasted_iota(jnp.int32, (1, _LANES), 1)

        # --- serial recurrence: MXU-free, transpose-free, history kept in vregs ---
        # The hidden state alternates row form (1, H) / column form (H, 1); W_hh is read in
        # the matching pre-transposed layout so no layout change sits on the tanh chain.
        h_row = h0_ref[...]                              # (1, H)
        h_col = None
        y_acc = jnp.zeros((1, _LANES), jnp.float32)      # lane-dense Linear output row

        for t in range(T):                               # static full unroll (T is tiny)
            x_t = x_ref[t]                               # scalar from SMEM
            if t % 2 == 0:
                # row -> col:  pre[j] = sum_k W_hh[j, k] * h[k]
                xw = x_t * wih_col + b_col                              # (H, 1), off-chain
                pre = jnp.sum(whh_jk * h_row, axis=1, keepdims=True)    # (H, 1) lane reduce
                h_col = jnp.tanh(pre + xw)                              # (H, 1)
                y_t = jnp.sum(wl_col * h_col, axis=0, keepdims=True)    # (1, 1), off-chain
            else:
                # col -> row:  pre[j] = sum_k h[k] * W_hh[j, k]
                xw = x_t * wih_row + b_row                              # (1, H), off-chain
                pre = jnp.sum(h_col * whh_kj, axis=0, keepdims=True)    # (1, H) sublane reduce
                h_row = jnp.tanh(pre + xw)                              # (1, H)
                y_t = jnp.sum(wl_row * h_row, axis=1, keepdims=True)    # (1, 1), off-chain
            # Drop y_t into lane t of the output row (VPU select, off the serial chain).
            y_acc = jnp.where(lane == t, y_t, y_acc)

        # Final hidden state in row form (static branch; odd-T path never traced for T=8).
        h_last = h_row if T % 2 == 0 else jnp.transpose(h_col)

        # --- single merged (8, 128)-aligned output slab: one dense writeback DMA ---
        out_ref[...] = jnp.zeros_like(out_ref)
        out_ref[0:1, :] = y_acc + b_l                    # Linear bias broadcast across lanes
        out_ref[1:2, 0:H] = h_last

    return kernel


def prepare_params(params):
    """One-time packing of all constant parameters into a single (R, 128) f32 slab.

    Row layout:
      [0:H,    0:H] W_hh[j, k]            [H:2H,   0:H] W_hh transposed [k, j]
      [2H:3H,  0:1] W_ih column           [3H:4H,  0:1] (b_ih + b_hh) column
      [4H:5H,  0:1] W_l column            [5H,     0:H] W_ih row
      [5H+1,   0:H] (b_ih + b_hh) row     [5H+2,   0:H] W_l row
      [5H+3,   0:1] b_l
    """
    f32 = jnp.float32
    w_hh = jnp.asarray(params["w_hh"], f32)
    H = w_hh.shape[0]
    assert params["w_ih"].shape == (H, 1) and params["w_l"].shape == (1, H), \
        "kernel specialized to the module's input_size=1, output_size=1"
    w_ih = jnp.asarray(params["w_ih"], f32).reshape(H)
    b_sum = (jnp.asarray(params["b_ih"], f32) + jnp.asarray(params["b_hh"], f32)).reshape(H)
    w_l = jnp.asarray(params["w_l"], f32).reshape(H)
    b_l = jnp.asarray(params["b_l"], f32).reshape(1)

    rows = _round_up(5 * H + 4, 8)
    slab = jnp.zeros((rows, _LANES), f32)
    slab = slab.at[0:H, 0:H].set(w_hh)
    slab = slab.at[H:2 * H, 0:H].set(w_hh.T)
    slab = slab.at[2 * H:3 * H, 0].set(w_ih)
    slab = slab.at[3 * H:4 * H, 0].set(b_sum)
    slab = slab.at[4 * H:5 * H, 0].set(w_l)
    slab = slab.at[5 * H + 0, 0:H].set(w_ih)
    slab = slab.at[5 * H + 1, 0:H].set(b_sum)
    slab = slab.at[5 * H + 2, 0:H].set(w_l)
    slab = slab.at[5 * H + 3, 0].set(b_l[0])
    return slab


def _net_forward(x, hidden_prev, param_slab):
    """Pallas equivalent of Net.forward(x, hidden_prev). x: (B, T, I), hidden_prev: (1, B, H)."""
    B, T, I = x.shape
    H = hidden_prev.shape[-1]
    O = 1
    # TODO(synk): B > 1 would need a batched (B,H)@(H,H) MXU path; the module fixes batch_size=1.
    assert B == 1 and I == 1, "kernel specialized to the module's B=1, I=1"
    assert B * T <= _LANES and H <= _LANES

    f32 = jnp.float32
    smem = pl.BlockSpec(memory_space=pltpu.MemorySpace.SMEM)
    vmem = pl.BlockSpec(memory_space=pltpu.MemorySpace.VMEM)

    out_slab = pl.pallas_call(
        _make_kernel(H, T),
        out_shape=jax.ShapeDtypeStruct((8, _LANES), f32),   # single merged, aligned output
        in_specs=[smem, vmem, vmem],
        out_specs=vmem,
    )(x.astype(f32).reshape(T),                              # T scalars -> SMEM
      hidden_prev.astype(f32).reshape(1, H),                 # h0 row -> VMEM
      param_slab)                                            # packed params (prepared once)

    out = out_slab[0, :B * T].reshape(1, B * T, O)
    hn = out_slab[1, :H].reshape(1, B, H)
    return out, hn


net_forward = jax.jit(_net_forward)


def ref_forward(x, hidden_prev, params):
    """Pure-JAX reference (mirrors PyTorch nn.RNN + nn.Linear)."""
    B, T, I = x.shape
    H = hidden_prev.shape[-1]
    h = hidden_prev[0]
    outs = []
    for t in range(T):
        pre = (x[:, t, :] @ params["w_ih"].T + params["b_ih"]
               + h @ params["w_hh"].T + params["b_hh"])
        h = jnp.tanh(pre)
        outs.append(h)
    out_h = jnp.stack(outs, axis=1)                       # (B, T, H)
    y = out_h.reshape(-1, H) @ params["w_l"].T + params["b_l"]
    return y[None, :, :], h[None, :, :]


if __name__ == "__main__":
    batch_size, seq_len, input_size, hidden_size, output_size = 1, 8, 1, 16, 1

    key = jax.random.PRNGKey(0)
    k_x, k_wih, k_whh, k_bih, k_bhh, k_wl, k_bl = jax.random.split(key, 7)

    # RNN params: normal(mean=0, std=0.001), like the PyTorch init loop.
    params = {
        "w_ih": 0.001 * jax.random.normal(k_wih, (hidden_size, input_size), jnp.float32),
        "w_hh": 0.001 * jax.random.normal(k_whh, (hidden_size, hidden_size), jnp.float32),
        "b_ih": 0.001 * jax.random.normal(k_bih, (hidden_size,), jnp.float32),
        "b_hh": 0.001 * jax.random.normal(k_bhh, (hidden_size,), jnp.float32),
        # Linear: PyTorch-style uniform(-1/sqrt(H), 1/sqrt(H)).
        "w_l": jax.random.uniform(k_wl, (output_size, hidden_size), jnp.float32,
                                  minval=-0.25, maxval=0.25),
        "b_l": jax.random.uniform(k_bl, (output_size,), jnp.float32,
                                  minval=-0.25, maxval=0.25),
    }

    x = jax.random.normal(k_x, (batch_size, seq_len, input_size), jnp.float32)
    hidden_prev = jnp.zeros((1, batch_size, hidden_size), jnp.float32)

    param_slab = prepare_params(params)                   # one-time packing (constant weights)

    out, hn = net_forward(x, hidden_prev, param_slab)
    out = jax.block_until_ready(out)
    hn = jax.block_until_ready(hn)

    out_ref, hn_ref = ref_forward(x, hidden_prev, params)

    assert out.shape == (1, batch_size * seq_len, output_size)
    assert hn.shape == (1, batch_size, hidden_size)
    assert jnp.allclose(out, out_ref, atol=1e-5, rtol=1e-5)
    assert jnp.allclose(hn, hn_ref, atol=1e-5, rtol=1e-5)

    print("KERNEL_OK")
</pallas_src>

<mosaic_0001>
module attributes {stable_mosaic.version = 11 : i64} {
  func.func @kernel(%arg0: memref<8xf32, #tpu.memory_space<smem>>, %arg1: memref<1x16xf32, #tpu.memory_space<vmem>>, %arg2: memref<88x128xf32, #tpu.memory_space<vmem>>, %arg3: memref<8x128xf32, #tpu.memory_space<vmem>>) attributes {dimension_semantics = [], scalar_prefetch = 0 : i64, scratch_operands = 0 : i64, tpu.core_type = #tpu.core_type<tc>} {
    %c0 = arith.constant 0 : index
    %c0_0 = arith.constant 0 : index
    %0 = vector.load %arg2[%c0, %c0_0] : memref<88x128xf32, #tpu.memory_space<vmem>>, vector<16x16xf32>
    %c16 = arith.constant 16 : index
    %c0_1 = arith.constant 0 : index
    %1 = vector.load %arg2[%c16, %c0_1] : memref<88x128xf32, #tpu.memory_space<vmem>>, vector<16x16xf32>
    %c32 = arith.constant 32 : index
    %c0_2 = arith.constant 0 : index
    %2 = vector.load %arg2[%c32, %c0_2] : memref<88x128xf32, #tpu.memory_space<vmem>>, vector<16x1xf32>
    %c48 = arith.constant 48 : index
    %c0_3 = arith.constant 0 : index
    %3 = vector.load %arg2[%c48, %c0_3] : memref<88x128xf32, #tpu.memory_space<vmem>>, vector<16x1xf32>
    %c64 = arith.constant 64 : index
    %c0_4 = arith.constant 0 : index
    %4 = vector.load %arg2[%c64, %c0_4] : memref<88x128xf32, #tpu.memory_space<vmem>>, vector<16x1xf32>
    %c80 = arith.constant 80 : index
    %c0_5 = arith.constant 0 : index
    %5 = vector.load %arg2[%c80, %c0_5] : memref<88x128xf32, #tpu.memory_space<vmem>>, vector<1x16xf32>
    %c81 = arith.constant 81 : index
    %c0_6 = arith.constant 0 : index
    %6 = vector.load %arg2[%c81, %c0_6] : memref<88x128xf32, #tpu.memory_space<vmem>>, vector<1x16xf32>
    %c82 = arith.constant 82 : index
    %c0_7 = arith.constant 0 : index
    %7 = vector.load %arg2[%c82, %c0_7] : memref<88x128xf32, #tpu.memory_space<vmem>>, vector<1x16xf32>
    %c83 = arith.constant 83 : index
    %c0_8 = arith.constant 0 : index
    %8 = vector.load %arg2[%c83, %c0_8] : memref<88x128xf32, #tpu.memory_space<vmem>>, vector<1x1xf32>
    %9 = tpu.iota {dimensions = array<i32: 1>} : vector<1x128xi32>
    %c0_9 = arith.constant 0 : index
    %c0_10 = arith.constant 0 : index
    %10 = vector.load %arg1[%c0_9, %c0_10] : memref<1x16xf32, #tpu.memory_space<vmem>>, vector<1x16xf32>
    %cst = arith.constant 0.000000e+00 : f32
    %11 = vector.broadcast %cst : f32 to vector<1x128xf32>
    %c0_11 = arith.constant 0 : index
    %12 = memref.load %arg0[%c0_11] : memref<8xf32, #tpu.memory_space<smem>>
    %13 = vector.broadcast %12 : f32 to vector<16x1xf32>
    %14 = arith.mulf %13, %2 : vector<16x1xf32>
    %15 = arith.addf %14, %3 : vector<16x1xf32>
    %16 = vector.broadcast %10 : vector<1x16xf32> to vector<16x16xf32>
    %17 = arith.mulf %0, %16 : vector<16x16xf32>
    %cst_12 = arith.constant dense<0.000000e+00> : vector<16xf32>
    %18 = vector.multi_reduction <add>, %17, %cst_12 [1] : vector<16x16xf32> to vector<16xf32>
    %19 = vector.shape_cast %18 : vector<16xf32> to vector<16x1xf32>
    %20 = arith.addf %19, %15 : vector<16x1xf32>
    %21 = math.tanh %20 : vector<16x1xf32>
    %22 = arith.mulf %4, %21 : vector<16x1xf32>
    %cst_13 = arith.constant dense<0.000000e+00> : vector<1xf32>
    %23 = vector.multi_reduction <add>, %22, %cst_13 [0] : vector<16x1xf32> to vector<1xf32>
    %24 = vector.shape_cast %23 : vector<1xf32> to vector<1x1xf32>
    %c0_i32 = arith.constant 0 : i32
    %25 = vector.broadcast %c0_i32 : i32 to vector<1x128xi32>
    %26 = arith.cmpi eq, %9, %25 : vector<1x128xi32>
    %27 = vector.shape_cast %24 : vector<1x1xf32> to vector<1x1xf32>
    %28 = vector.broadcast %27 : vector<1x1xf32> to vector<1x128xf32>
    %29 = arith.select %26, %28, %11 : vector<1x128xi1>, vector<1x128xf32>
    %c1 = arith.constant 1 : index
    %30 = memref.load %arg0[%c1] : memref<8xf32, #tpu.memory_space<smem>>
    %31 = vector.broadcast %30 : f32 to vector<1x16xf32>
    %32 = arith.mulf %31, %5 : vector<1x16xf32>
    %33 = arith.addf %32, %6 : vector<1x16xf32>
    %34 = vector.broadcast %21 : vector<16x1xf32> to vector<16x16xf32>
    %35 = arith.mulf %34, %1 : vector<16x16xf32>
    %cst_14 = arith.constant dense<0.000000e+00> : vector<16xf32>
    %36 = vector.multi_reduction <add>, %35, %cst_14 [0] : vector<16x16xf32> to vector<16xf32>
    %37 = vector.shape_cast %36 : vector<16xf32> to vector<1x16xf32>
    %38 = arith.addf %37, %33 : vector<1x16xf32>
    %39 = math.tanh %38 : vector<1x16xf32>
    %40 = arith.mulf %7, %39 : vector<1x16xf32>
    %cst_15 = arith.constant dense<0.000000e+00> : vector<1xf32>
    %41 = vector.multi_reduction <add>, %40, %cst_15 [1] : vector<1x16xf32> to vector<1xf32>
    %42 = vector.shape_cast %41 : vector<1xf32> to vector<1x1xf32>
    %c1_i32 = arith.constant 1 : i32
    %43 = vector.broadcast %c1_i32 : i32 to vector<1x128xi32>
    %44 = arith.cmpi eq, %9, %43 : vector<1x128xi32>
    %45 = vector.shape_cast %42 : vector<1x1xf32> to vector<1x1xf32>
    %46 = vector.broadcast %45 : vector<1x1xf32> to vector<1x128xf32>
    %47 = arith.select %44, %46, %29 : vector<1x128xi1>, vector<1x128xf32>
    %c2 = arith.constant 2 : index
    %48 = memref.load %arg0[%c2] : memref<8xf32, #tpu.memory_space<smem>>
    %49 = vector.broadcast %48 : f32 to vector<16x1xf32>
    %50 = arith.mulf %49, %2 : vector<16x1xf32>
    %51 = arith.addf %50, %3 : vector<16x1xf32>
    %52 = vector.broadcast %39 : vector<1x16xf32> to vector<16x16xf32>
    %53 = arith.mulf %0, %52 : vector<16x16xf32>
    %cst_16 = arith.constant dense<0.000000e+00> : vector<16xf32>
    %54 = vector.multi_reduction <add>, %53, %cst_16 [1] : vector<16x16xf32> to vector<16xf32>
    %55 = vector.shape_cast %54 : vector<16xf32> to vector<16x1xf32>
    %56 = arith.addf %55, %51 : vector<16x1xf32>
    %57 = math.tanh %56 : vector<16x1xf32>
    %58 = arith.mulf %4, %57 : vector<16x1xf32>
    %cst_17 = arith.constant dense<0.000000e+00> : vector<1xf32>
    %59 = vector.multi_reduction <add>, %58, %cst_17 [0] : vector<16x1xf32> to vector<1xf32>
    %60 = vector.shape_cast %59 : vector<1xf32> to vector<1x1xf32>
    %c2_i32 = arith.constant 2 : i32
    %61 = vector.broadcast %c2_i32 : i32 to vector<1x128xi32>
    %62 = arith.cmpi eq, %9, %61 : vector<1x128xi32>
    %63 = vector.shape_cast %60 : vector<1x1xf32> to vector<1x1xf32>
    %64 = vector.broadcast %63 : vector<1x1xf32> to vector<1x128xf32>
    %65 = arith.select %62, %64, %47 : vector<1x128xi1>, vector<1x128xf32>
    %c3 = arith.constant 3 : index
    %66 = memref.load %arg0[%c3] : memref<8xf32, #tpu.memory_space<smem>>
    %67 = vector.broadcast %66 : f32 to vector<1x16xf32>
    %68 = arith.mulf %67, %5 : vector<1x16xf32>
    %69 = arith.addf %68, %6 : vector<1x16xf32>
    %70 = vector.broadcast %57 : vector<16x1xf32> to vector<16x16xf32>
    %71 = arith.mulf %70, %1 : vector<16x16xf32>
    %cst_18 = arith.constant dense<0.000000e+00> : vector<16xf32>
    %72 = vector.multi_reduction <add>, %71, %cst_18 [0] : vector<16x16xf32> to vector<16xf32>
    %73 = vector.shape_cast %72 : vector<16xf32> to vector<1x16xf32>
    %74 = arith.addf %73, %69 : vector<1x16xf32>
    %75 = math.tanh %74 : vector<1x16xf32>
    %76 = arith.mulf %7, %75 : vector<1x16xf32>
    %cst_19 = arith.constant dense<0.000000e+00> : vector<1xf32>
    %77 = vector.multi_reduction <add>, %76, %cst_19 [1] : vector<1x16xf32> to vector<1xf32>
    %78 = vector.shape_cast %77 : vector<1xf32> to vector<1x1xf32>
    %c3_i32 = arith.constant 3 : i32
    %79 = vector.broadcast %c3_i32 : i32 to vector<1x128xi32>
    %80 = arith.cmpi eq, %9, %79 : vector<1x128xi32>
    %81 = vector.shape_cast %78 : vector<1x1xf32> to vector<1x1xf32>
    %82 = vector.broadcast %81 : vector<1x1xf32> to vector<1x128xf32>
    %83 = arith.select %80, %82, %65 : vector<1x128xi1>, vector<1x128xf32>
    %c4 = arith.constant 4 : index
    %84 = memref.load %arg0[%c4] : memref<8xf32, #tpu.memory_space<smem>>
    %85 = vector.broadcast %84 : f32 to vector<16x1xf32>
    %86 = arith.mulf %85, %2 : vector<16x1xf32>
    %87 = arith.addf %86, %3 : vector<16x1xf32>
    %88 = vector.broadcast %75 : vector<1x16xf32> to vector<16x16xf32>
    %89 = arith.mulf %0, %88 : vector<16x16xf32>
    %cst_20 = arith.constant dense<0.000000e+00> : vector<16xf32>
    %90 = vector.multi_reduction <add>, %89, %cst_20 [1] : vector<16x16xf32> to vector<16xf32>
    %91 = vector.shape_cast %90 : vector<16xf32> to vector<16x1xf32>
    %92 = arith.addf %91, %87 : vector<16x1xf32>
    %93 = math.tanh %92 : vector<16x1xf32>
    %94 = arith.mulf %4, %93 : vector<16x1xf32>
    %cst_21 = arith.constant dense<0.000000e+00> : vector<1xf32>
    %95 = vector.multi_reduction <add>, %94, %cst_21 [0] : vector<16x1xf32> to vector<1xf32>
    %96 = vector.shape_cast %95 : vector<1xf32> to vector<1x1xf32>
    %c4_i32 = arith.constant 4 : i32
    %97 = vector.broadcast %c4_i32 : i32 to vector<1x128xi32>
    %98 = arith.cmpi eq, %9, %97 : vector<1x128xi32>
    %99 = vector.shape_cast %96 : vector<1x1xf32> to vector<1x1xf32>
    %100 = vector.broadcast %99 : vector<1x1xf32> to vector<1x128xf32>
    %101 = arith.select %98, %100, %83 : vector<1x128xi1>, vector<1x128xf32>
    %c5 = arith.constant 5 : index
    %102 = memref.load %arg0[%c5] : memref<8xf32, #tpu.memory_space<smem>>
    %103 = vector.broadcast %102 : f32 to vector<1x16xf32>
    %104 = arith.mulf %103, %5 : vector<1x16xf32>
    %105 = arith.addf %104, %6 : vector<1x16xf32>
    %106 = vector.broadcast %93 : vector<16x1xf32> to vector<16x16xf32>
    %107 = arith.mulf %106, %1 : vector<16x16xf32>
    %cst_22 = arith.constant dense<0.000000e+00> : vector<16xf32>
    %108 = vector.multi_reduction <add>, %107, %cst_22 [0] : vector<16x16xf32> to vector<16xf32>
    %109 = vector.shape_cast %108 : vector<16xf32> to vector<1x16xf32>
    %110 = arith.addf %109, %105 : vector<1x16xf32>
    %111 = math.tanh %110 : vector<1x16xf32>
    %112 = arith.mulf %7, %111 : vector<1x16xf32>
    %cst_23 = arith.constant dense<0.000000e+00> : vector<1xf32>
    %113 = vector.multi_reduction <add>, %112, %cst_23 [1] : vector<1x16xf32> to vector<1xf32>
    %114 = vector.shape_cast %113 : vector<1xf32> to vector<1x1xf32>
    %c5_i32 = arith.constant 5 : i32
    %115 = vector.broadcast %c5_i32 : i32 to vector<1x128xi32>
    %116 = arith.cmpi eq, %9, %115 : vector<1x128xi32>
    %117 = vector.shape_cast %114 : vector<1x1xf32> to vector<1x1xf32>
    %118 = vector.broadcast %117 : vector<1x1xf32> to vector<1x128xf32>
    %119 = arith.select %116, %118, %101 : vector<1x128xi1>, vector<1x128xf32>
    %c6 = arith.constant 6 : index
    %120 = memref.load %arg0[%c6] : memref<8xf32, #tpu.memory_space<smem>>
    %121 = vector.broadcast %120 : f32 to vector<16x1xf32>
    %122 = arith.mulf %121, %2 : vector<16x1xf32>
    %123 = arith.addf %122, %3 : vector<16x1xf32>
    %124 = vector.broadcast %111 : vector<1x16xf32> to vector<16x16xf32>
    %125 = arith.mulf %0, %124 : vector<16x16xf32>
    %cst_24 = arith.constant dense<0.000000e+00> : vector<16xf32>
    %126 = vector.multi_reduction <add>, %125, %cst_24 [1] : vector<16x16xf32> to vector<16xf32>
    %127 = vector.shape_cast %126 : vector<16xf32> to vector<16x1xf32>
    %128 = arith.addf %127, %123 : vector<16x1xf32>
    %129 = math.tanh %128 : vector<16x1xf32>
    %130 = arith.mulf %4, %129 : vector<16x1xf32>
    %cst_25 = arith.constant dense<0.000000e+00> : vector<1xf32>
    %131 = vector.multi_reduction <add>, %130, %cst_25 [0] : vector<16x1xf32> to vector<1xf32>
    %132 = vector.shape_cast %131 : vector<1xf32> to vector<1x1xf32>
    %c6_i32 = arith.constant 6 : i32
    %133 = vector.broadcast %c6_i32 : i32 to vector<1x128xi32>
    %134 = arith.cmpi eq, %9, %133 : vector<1x128xi32>
    %135 = vector.shape_cast %132 : vector<1x1xf32> to vector<1x1xf32>
    %136 = vector.broadcast %135 : vector<1x1xf32> to vector<1x128xf32>
    %137 = arith.select %134, %136, %119 : vector<1x128xi1>, vector<1x128xf32>
    %c7 = arith.constant 7 : index
    %138 = memref.load %arg0[%c7] : memref<8xf32, #tpu.memory_space<smem>>
    %139 = vector.broadcast %138 : f32 to vector<1x16xf32>
    %140 = arith.mulf %139, %5 : vector<1x16xf32>
    %141 = arith.addf %140, %6 : vector<1x16xf32>
    %142 = vector.broadcast %129 : vector<16x1xf32> to vector<16x16xf32>
    %143 = arith.mulf %142, %1 : vector<16x16xf32>
    %cst_26 = arith.constant dense<0.000000e+00> : vector<16xf32>
    %144 = vector.multi_reduction <add>, %143, %cst_26 [0] : vector<16x16xf32> to vector<16xf32>
    %145 = vector.shape_cast %144 : vector<16xf32> to vector<1x16xf32>
    %146 = arith.addf %145, %141 : vector<1x16xf32>
    %147 = math.tanh %146 : vector<1x16xf32>
    %148 = arith.mulf %7, %147 : vector<1x16xf32>
    %cst_27 = arith.constant dense<0.000000e+00> : vector<1xf32>
    %149 = vector.multi_reduction <add>, %148, %cst_27 [1] : vector<1x16xf32> to vector<1xf32>
    %150 = vector.shape_cast %149 : vector<1xf32> to vector<1x1xf32>
    %c7_i32 = arith.constant 7 : i32
    %151 = vector.broadcast %c7_i32 : i32 to vector<1x128xi32>
    %152 = arith.cmpi eq, %9, %151 : vector<1x128xi32>
    %153 = vector.shape_cast %150 : vector<1x1xf32> to vector<1x1xf32>
    %154 = vector.broadcast %153 : vector<1x1xf32> to vector<1x128xf32>
    %155 = arith.select %152, %154, %137 : vector<1x128xi1>, vector<1x128xf32>
    %cst_28 = arith.constant 0.000000e+00 : f32
    %156 = vector.broadcast %cst_28 : f32 to vector<8x128xf32>
    %c0_29 = arith.constant 0 : index
    %c0_30 = arith.constant 0 : index
    %157 = vector.load %arg3[%c0_29, %c0_30] : memref<8x128xf32, #tpu.memory_space<vmem>>, vector<8x128xf32>
    tpu.vector_store %arg3[%c0_29, %c0_30], %156 {strides = array<i32>} : memref<8x128xf32, #tpu.memory_space<vmem>>, vector<8x128xf32>,
    %158 = vector.broadcast %8 : vector<1x1xf32> to vector<1x128xf32>
    %159 = arith.addf %155, %158 : vector<1x128xf32>
    %c0_31 = arith.constant 0 : index
    %c0_32 = arith.constant 0 : index
    %160 = vector.load %arg3[%c0_31, %c0_32] : memref<8x128xf32, #tpu.memory_space<vmem>>, vector<1x128xf32>
    tpu.vector_store %arg3[%c0_31, %c0_32], %159 {strides = array<i32>} : memref<8x128xf32, #tpu.memory_space<vmem>>, vector<1x128xf32>,
    %c1_33 = arith.constant 1 : index
    %c0_34 = arith.constant 0 : index
    %161 = vector.load %arg3[%c1_33, %c0_34] : memref<8x128xf32, #tpu.memory_space<vmem>>, vector<1x16xf32>
    tpu.vector_store %arg3[%c1_33, %c0_34], %147 {strides = array<i32>} : memref<8x128xf32, #tpu.memory_space<vmem>>, vector<1x16xf32>,
    return
  }
}

</mosaic_0001>

<bundles_post_ra>
// kernel: _net_forward.1
= control target key start
LH: loop header
LB: loop body
LE: loop exit
PB: predicated region body
PF: predicated region fallthrough
CT: control target
= control target key end

     0   :  { %8 = vsyncpa [#allocation4], 0  ;;  %s624_s0 = inlined_call_operand.vmem [shape: f32[8], index: 0, kind: input, shape index: {}]   ;;  %s625_s1 = inlined_call_operand.vmem [shape: f32[1,16], index: 1, kind: input, shape index: {}]   ;;  %s626_s2 = inlined_call_operand.hbm [shape: f32[88,128], index: 2, kind: input, shape index: {}]   ;;  %s627_s3 = inlined_call_operand.vmem [shape: f32[8,128], index: 3, kind: output, shape index: {}]  }
   0x1   :  { %s16_s14 = sshll.u32 %s624_s0, 4  ;;  %s17_s14 = int_to_ptr.vmem [resolvable:$true] %s16_s14 }
   0x2   :  { %9 = vsyncpa [#allocation3], 0  ;;  %s410_s15 = scalar_lea.vmem %s17_s14, 16  ;;  %p415_p1 = scmp.lt.s32.totalorder %s17_s14, %s17_s14 }
   0x3   :  { %p411_p0 = scmp.ne.s32.totalorder %s17_s14, %s410_s15  ;;  %p416_p2 = scmp.lt.s32.totalorder %s410_s15, %s410_s15 }
   0x5   :  { %p417_p3 = por %p416_p2, %p415_p1 }
   0x7   :  { %p418_p4 = pnand %p417_p3, %p411_p0 }
   0x9   :  { %421 = shalt.err (!%p418_p4)
}
   0xa   :  { %s446_s16 = smov [#allocation2]   ;;  %s447_s17 = smov [#allocation5]  }
   0xb   :  { %19 = dma.vmem_to_smem %s17_s14, 16, %s446_s16, [#allocation4]  }
   0xc   :  { %s27_s18 = sshll.u32 %s447_s17, 4  ;;  %s28_s18 = int_to_ptr.vmem [resolvable:$true] %s27_s18 }
   0xd   :  { %s430_s19 = scalar_lea.vmem %s28_s18, 1408  ;;  %p435_p6 = scmp.lt.s32.totalorder %s28_s18, %s28_s18 }
   0xe   :  { %p431_p5 = scmp.ne.s32.totalorder %s28_s18, %s430_s19  ;;  %p436_p7 = scmp.lt.s32.totalorder %s430_s19, %s430_s19 }
  0x10   :  { %p437_p8 = por %p436_p7, %p435_p6 }
  0x12   :  { %p438_p9 = pnand %p437_p8, %p431_p5 }
  0x14   :  { %441 = shalt.err (!%p438_p9)
}
  0x15   :  { %s448_s0 = smov 128   ;;  %s449_s20 = smov 8  }
  0x16   :  { %33 = dma.hbm_to_vmem [thread:$0]  %s626_s2, 1408, %s28_s18, [#allocation3], %s448_s0, %s448_s0, %s449_s20  }
  0x17   :  { %442 = dma.done.wait [#allocation4], 16  }
  0x18   :  { %443 = vsyncadd [#allocation4], 4294967280 }
  0x19   :  { %444 = dma.done.wait [#allocation3], 1408  }
  0x1a   :  { %445 = vsyncadd [#allocation3], 4294965888 }
  0x1b   :  { %40 = sfence }
  0x1c   :  { %v478_v0 = vld [vmem:[#allocation5] sm:$0xff]  ;;  %vm72_vm0 = vcmask 130048   ;;  %v483_v2 = vld [vmem:[#allocation5 + $0x8] sm:$0xff]  ;;  %v450_v7 = vmov 0   ;;  %s58_s2 = sld [smem:[#allocation2]]  ;;  %v492_v11 = vld [vmem:[#allocation5 + $0x30] sm:$0xff]  ;;  %v55_v51 = vlaneseq }
  0x1d   :  { %v370_v1 = vld [vmem:[%s625_s1] ss:$0 sm:$0xff]  ;;  %384 = vset.pattern.permute.xlu1 %v450_v7  ;;  %385 = vset.pattern.permute.xlu0 %v450_v7  ;;  %v494_v12 = vld [vmem:[#allocation5 + $0x28] sm:$0xff]  ;;  %v498_v15 = vld [vmem:[#allocation5 + $0x38] sm:$0xff]  ;;  %vm85_vm1 = vcmask 7168   ;;  %s371_s1 = sld [smem:[#allocation2 + $0x1]] }
  0x1e   :  { %v70_v3 = vmul.f32 %v370_v1, %v478_v0  ;;  %v71_v4 = vmul.f32 %v370_v1, %v483_v2  ;;  %v489_v8 = vld [vmem:[#allocation5 + $0x20] sm:$0xff]  ;;  %v503_v23 = vld [vmem:[#allocation5 + $0x48] sm:$0xff]  ;;  %v511_v30 = vld [vmem:[#allocation5 + $0x10] sm:$0xff]  ;;  %v143_v52 = vshrl.u32 %v55_v51, 7  ;;  %s372_s25 = sld [smem:[#allocation2 + $0x2]]  ;;  %vm130_vm2 = vcmask 122880  }
  0x1f   :  { %v501_v22 = vld [vmem:[#allocation5 + $0x40] sm:$0xff]  ;;  %v513_v32 = vld [vmem:[#allocation5 + $0x18] sm:$0xff]  ;;  %v519_v40 = vld [vmem:[#allocation5 + $0x50] sm:$0x1]  ;;  %s373_s26 = sld [smem:[#allocation2 + $0x3]] }
  0x20   :  { %v73_v5 = vsel %vm72_vm0, %v70_v3, 0.0  ;;  %v76_v6 = vsel %vm72_vm0, %v71_v4, 0.0  ;;  %v522_v45 = vld [vmem:[#allocation5 + $0x51] sm:$0x1]  ;;  %v526_v53 = vsub.s32 0, %v143_v52  ;;  %s374_s27 = sld [smem:[#allocation2 + $0x4]] }
  0x21   :  { %74 = vadd.xlane.f32.xlu0 %v73_v5  ;;  %s375_s28 = sld [smem:[#allocation2 + $0x5]] }
  0x22   :  { %v59_v9 = vstv %s58_s2  ;;  %s376_s29 = sld [smem:[#allocation2 + $0x6]] }
  0x23   :  { %v60_v10 = vmul.f32 %v59_v9, %v489_v8  ;;  %v61_v14 = vmul.f32 %v59_v9, %v494_v12  ;;  %v103_v41 = vstv %s371_s1  ;;  %s377_s5 = sld [smem:[#allocation2 + $0x7]] }
  0x24   :  { %v104_v43 = vmul.f32 %v103_v41, %v519_v40  ;;  %v137_v60 = vstv %s372_s25 }
  0x25   :  { %77 = vadd.xlane.f32.xlu0 %v76_v6  ;;  %v62_v13 = vadd.f32 %v60_v10, %v492_v11  ;;  %v63_v18 = vadd.f32 %v61_v14, %v498_v15  ;;  %v139_v61 = vmul.f32 %v137_v60, %v494_v12  ;;  %v138_v62 = vmul.f32 %v137_v60, %v489_v8 }
  0x26   :  { %v105_v47 = vadd.f32 %v104_v43, %v522_v45 }
  0x27   :  { %v141_v63 = vadd.f32 %v139_v61, %v498_v15  ;;  %v140_v1 = vadd.f32 %v138_v62, %v492_v11 }
  0xaa   :  { %v75_v16 = vpop.xlane.xlu0 %74 }
  0xab   :  { %v79_v17 = vadd.f32 %v75_v16, %v62_v13 }
  0xad   :  { %386 = vtanh.f32 %v79_v17 }
  0xae   :  { %v78_v19 = vpop.xlane.xlu0 %77 }
  0xaf   :  { %v80_v20 = vadd.f32 %v78_v19, %v63_v18 }
  0xb1   :  { %388 = vtanh.f32 %v80_v20 }
  0xba   :  { %v387_v21 = vpop.eup %386 }
  0xbb   :  { %108 = vperm.xlu1 %384, %v387_v21   ;;  %v83_v24 = vmul.f32 %v387_v21, %v501_v22 }
  0xbd   :  { %v86_v27 = vsel %vm85_vm1, %v83_v24, 0.0 }
  0xbe   :  { %v389_v25 = vpop.eup %388 }
  0xbf   :  { %113 = vperm.xlu1 %384, %v389_v25   ;;  %v84_v26 = vmul.f32 %v389_v25, %v503_v23 }
  0xc1   :  { %v87_v28 = vsel %vm85_vm1, %v84_v26, 0.0 }
  0xc2   :  { %v509_v29 = vadd.f32 %v87_v28, %v86_v27  ;;  %v177_v28 = vstv %s373_s26 }
 0x136   :  { %v109_v31 = vpop.permute.xlu1 %108 }
 0x137   :  { %v116_v33 = vmul.f32 %v109_v31, %v511_v30 }
 0x139   :  { %v118_v36 = vsel %vm72_vm0, %v116_v33, 0.0  ;;  %v178_v33 = vmul.f32 %v177_v28, %v519_v40 }
 0x13a   :  { %v114_v34 = vpop.permute.xlu1 %113 }
 0x13b   :  { %v117_v35 = vmul.f32 %v114_v34, %v513_v32 }
 0x13d   :  { %v119_v37 = vsel %vm72_vm0, %v117_v35, 0.0 }
 0x13e   :  { %v120_v38 = vadd.f32 %v119_v37, %v118_v36  ;;  %v179_v36 = vadd.f32 %v178_v33, %v522_v45 }
 0x140   :  { %v121_v39 = vrot.slane %v120_v38, 4 }
 0x142   :  { %v122_v42 = vadd.f32 %v121_v39, %v120_v38 }
 0x144   :  { %v123_v44 = vrot.slane %v122_v42, 2 }
 0x146   :  { %v124_v46 = vadd.f32 %v123_v44, %v122_v42 }
 0x148   :  { %v125_v48 = vrot.slane %v124_v46, 1 }
 0x14a   :  { %v126_v49 = vadd.f32 %v125_v48, %v124_v46  ;;  %v210_v48 = vstv %s374_s27 }
 0x14c   :  { %v127_v50 = vadd.f32 %v126_v49, %v105_v47  ;;  %v212_v49 = vmul.f32 %v210_v48, %v494_v12 }
 0x14e   :  { %390 = vtanh.f32 %v127_v50  ;;  %v211_v50 = vmul.f32 %v210_v48, %v489_v8  ;;  %v214_v52 = vadd.f32 %v212_v49, %v498_v15  ;;  %v585_v49 = vld [vmem:[#allocation5 + $0x52] sm:$0x1] }
 0x15b   :  { %v528_v54 = vpop.eup %390 }
 0x15c   :  { %v145_v55 = vrot.slane %v528_v54, %v526_v53 }
 0x15e   :  { %v147_v56 = vmul.f32 %v145_v55, %v483_v2  ;;  %v146_v57 = vmul.f32 %v145_v55, %v478_v0  ;;  %v213_v55 = vadd.f32 %v211_v50, %v492_v11 }
 0x160   :  { %v151_v58 = vsel %vm72_vm0, %v147_v56, 0.0  ;;  %v148_v59 = vsel %vm72_vm0, %v146_v57, 0.0 }
 0x161   :  { %152 = vadd.xlane.f32.xlu1 %v151_v58  ;;  %149 = vadd.xlane.f32.xlu0 %v148_v59 }
 0x1ea   :  { %v153_v3 = vpop.xlane.xlu1 %152  ;;  %v150_v4 = vpop.xlane.xlu0 %149 }
 0x1eb   :  { %v155_v5 = vadd.f32 %v153_v3, %v141_v63  ;;  %v154_v6 = vadd.f32 %v150_v4, %v140_v1 }
 0x1ed   :  { %392 = vtanh.f32 %v155_v5 }
 0x1ee   :  { %394 = vtanh.f32 %v154_v6 }
 0x1fa   :  { %v393_v7 = vpop.eup %392 }
 0x1fb   :  { %v395_v9 = vpop.eup %394  ;;  %187 = vperm.xlu1 %384, %v393_v7   ;;  %v159_v10 = vmul.f32 %v393_v7, %v503_v23 }
 0x1fc   :  { %182 = vperm.xlu0 %385, %v395_v9   ;;  %v158_v13 = vmul.f32 %v395_v9, %v501_v22 }
 0x1fd   :  { %v161_v14 = vsel %vm85_vm1, %v159_v10, 0.0 }
 0x1fe   :  { %v160_v16 = vsel %vm85_vm1, %v158_v13, 0.0 }
 0x1ff   :  { %v544_v17 = vadd.f32 %v161_v14, %v160_v16 }
 0x276   :  { %v188_v18 = vpop.permute.xlu1 %187 }
 0x277   :  { %v191_v19 = vmul.f32 %v188_v18, %v513_v32  ;;  %v183_v20 = vpop.permute.xlu0 %182  ;;  %v250_v18 = vstv %s375_s28 }
 0x278   :  { %v190_v21 = vmul.f32 %v183_v20, %v511_v30  ;;  %v251_v20 = vmul.f32 %v250_v18, %v519_v40 }
 0x279   :  { %v193_v24 = vsel %vm72_vm0, %v191_v19, 0.0 }
 0x27a   :  { %v192_v25 = vsel %vm72_vm0, %v190_v21, 0.0 }
 0x27b   :  { %v194_v26 = vadd.f32 %v193_v24, %v192_v25  ;;  %v252_v25 = vadd.f32 %v251_v20, %v522_v45 }
 0x27d   :  { %v195_v27 = vrot.slane %v194_v26, 4 }
 0x27f   :  { %v196_v31 = vadd.f32 %v195_v27, %v194_v26 }
 0x281   :  { %v197_v34 = vrot.slane %v196_v31, 2 }
 0x283   :  { %v198_v35 = vadd.f32 %v197_v34, %v196_v31 }
 0x285   :  { %v199_v37 = vrot.slane %v198_v35, 1 }
 0x287   :  { %v200_v38 = vadd.f32 %v199_v37, %v198_v35 }
 0x289   :  { %v201_v39 = vadd.f32 %v200_v38, %v179_v36  ;;  %v283_v38 = vstv %s376_s29 }
 0x28b   :  { %396 = vtanh.f32 %v201_v39  ;;  %v285_v39 = vmul.f32 %v283_v38, %v494_v12  ;;  %v129_v12 = vmul.f32 %v528_v54, %v585_v49 }
 0x298   :  { %v552_v41 = vpop.eup %396 }
 0x299   :  { %v218_v42 = vrot.slane %v552_v41, %v526_v53  ;;  %v203_v50 = vmul.f32 %v552_v41, %v585_v49 }
 0x29b   :  { %v220_v43 = vmul.f32 %v218_v42, %v483_v2  ;;  %v219_v44 = vmul.f32 %v218_v42, %v478_v0  ;;  %v284_v42 = vmul.f32 %v283_v38, %v489_v8  ;;  %v451_v8 = vmov 0.0  }
 0x29c   :  { %355 = vst [vmem:[%s627_s3] sm:$0xff] %v451_v8 }
 0x29d   :  { %v224_v46 = vsel %vm72_vm0, %v220_v43, 0.0  ;;  %v221_v47 = vsel %vm72_vm0, %v219_v44, 0.0  ;;  %v287_v43 = vadd.f32 %v285_v39, %v498_v15 }
 0x29e   :  { %225 = vadd.xlane.f32.xlu1 %v224_v46  ;;  %222 = vadd.xlane.f32.xlu0 %v221_v47 }
 0x327   :  { %v226_v56 = vpop.xlane.xlu1 %225  ;;  %v223_v57 = vpop.xlane.xlu0 %222 }
 0x328   :  { %v228_v58 = vadd.f32 %v226_v56, %v214_v52  ;;  %v227_v59 = vadd.f32 %v223_v57, %v213_v55  ;;  %v163_v52 = vrot.slane %v544_v17, 4  ;;  %v204_v57 = vsel %vm130_vm2, %v203_v50, 0.0 }
 0x32a   :  { %398 = vtanh.f32 %v228_v58  ;;  %v164_v58 = vadd.f32 %v163_v52, %v544_v17 }
 0x32b   :  { %400 = vtanh.f32 %v227_v59  ;;  %v89_v59 = vrot.slane %v509_v29, 4 }
 0x337   :  { %v399_v60 = vpop.eup %398 }
 0x338   :  { %v401_v61 = vpop.eup %400  ;;  %260 = vperm.xlu1 %384, %v399_v60   ;;  %v232_v62 = vmul.f32 %v399_v60, %v503_v23 }
 0x339   :  { %255 = vperm.xlu0 %385, %v401_v61   ;;  %v231_v63 = vmul.f32 %v401_v61, %v501_v22  ;;  %v165_v61 = vrot.slane %v164_v58, 2 }
 0x33a   :  { %v234_v1 = vsel %vm85_vm1, %v232_v62, 0.0  ;;  %v90_v62 = vadd.f32 %v89_v59, %v509_v29 }
 0x33b   :  { %v233_v3 = vsel %vm85_vm1, %v231_v63, 0.0  ;;  %v166_v63 = vadd.f32 %v165_v61, %v164_v58 }
 0x33c   :  { %v568_v4 = vadd.f32 %v234_v1, %v233_v3  ;;  %v91_v1 = vrot.slane %v90_v62, 2 }
 0x33d   :  { %v167_v17 = vrot.slane %v166_v63, 1 }
 0x3b3   :  { %v261_v5 = vpop.permute.xlu1 %260 }
 0x3b4   :  { %v264_v6 = vmul.f32 %v261_v5, %v513_v32  ;;  %v256_v7 = vpop.permute.xlu0 %255 }
 0x3b5   :  { %v263_v9 = vmul.f32 %v256_v7, %v511_v30 }
 0x3b6   :  { %v266_v10 = vsel %vm72_vm0, %v264_v6, 0.0  ;;  %v92_v6 = vadd.f32 %v91_v1, %v90_v62 }
 0x3b7   :  { %v265_v13 = vsel %vm72_vm0, %v263_v9, 0.0 }
 0x3b8   :  { %v267_v14 = vadd.f32 %v266_v10, %v265_v13  ;;  %v168_v10 = vadd.f32 %v167_v17, %v166_v63  ;;  %v93_v13 = vrot.slane %v92_v6, 1 }
 0x3ba   :  { %v268_v16 = vrot.slane %v267_v14, 4  ;;  %v94_v18 = vadd.f32 %v93_v13, %v92_v6 }
 0x3bc   :  { %v269_v19 = vadd.f32 %v268_v16, %v267_v14 }
 0x3be   :  { %v270_v21 = vrot.slane %v269_v19, 2 }
 0x3c0   :  { %v271_v24 = vadd.f32 %v270_v21, %v269_v19 }
 0x3c2   :  { %v272_v26 = vrot.slane %v271_v24, 1 }
 0x3c4   :  { %v273_v27 = vadd.f32 %v272_v26, %v271_v24 }
 0x3c6   :  { %v274_v28 = vadd.f32 %v273_v27, %v252_v25 }
 0x3c8   :  { %402 = vtanh.f32 %v274_v28 }
 0x3d5   :  { %v403_v31 = vpop.eup %402 }
 0x3d6   :  { %v291_v33 = vrot.slane %v403_v31, %v526_v53  ;;  %v286_v53 = vadd.f32 %v284_v42, %v492_v11  ;;  %v131_v11 = vsel %vm130_vm2, %v129_v12, 0.0  ;;  %v276_v15 = vmul.f32 %v403_v31, %v585_v49 }
 0x3d8   :  { %v293_v34 = vmul.f32 %v291_v33, %v483_v2  ;;  %v292_v35 = vmul.f32 %v291_v33, %v478_v0  ;;  %v277_v56 = vsel %vm130_vm2, %v276_v15, 0.0 }
 0x3da   :  { %v297_v36 = vsel %vm72_vm0, %v293_v34, 0.0  ;;  %v294_v37 = vsel %vm72_vm0, %v292_v35, 0.0  ;;  %v323_v35 = vstv %s377_s5 }
 0x3db   :  { %298 = vadd.xlane.f32.xlu1 %v297_v36  ;;  %295 = vadd.xlane.f32.xlu0 %v294_v37  ;;  %v324_v37 = vmul.f32 %v323_v35, %v519_v40  ;;  %v54_v40 = vld [vmem:[#allocation5 + $0x53] sm:$0x1] }
 0x3dd   :  { %v325_v42 = vadd.f32 %v324_v37, %v522_v45  ;;  %v56_v45 = vand.u32 127, %v55_v51 }
 0x3df   :  { %vm95_vm3 = vcmp.eq.s32.totalorder %v56_v45, 0  ;;  %vm134_vm4 = vcmp.eq.s32.totalorder %v56_v45, 1  ;;  %vm169_vm5 = vcmp.eq.s32.totalorder %v56_v45, 2  ;;  %vm207_vm6 = vcmp.eq.s32.totalorder %v56_v45, 3 }
 0x3e0   :  { %vm242_vm7 = vcmp.eq.s32.totalorder %v56_v45, 4  ;;  %vm280_vm8 = vcmp.eq.s32.totalorder %v56_v45, 5  ;;  %vm315_vm9 = vcmp.eq.s32.totalorder %v56_v45, 6  ;;  %vm353_vm10 = vcmp.eq.s32.totalorder %v56_v45, 7 }
 0x464   :  { %v299_v44 = vpop.xlane.xlu1 %298  ;;  %v296_v2 = vpop.xlane.xlu0 %295 }
 0x465   :  { %v301_v46 = vadd.f32 %v299_v44, %v287_v43  ;;  %v300_v0 = vadd.f32 %v296_v2, %v286_v53 }
 0x467   :  { %404 = vtanh.f32 %v301_v46 }
 0x468   :  { %406 = vtanh.f32 %v300_v0 }
 0x474   :  { %v405_v47 = vpop.eup %404 }
 0x475   :  { %v407_v48 = vpop.eup %406  ;;  %333 = vperm.xlu1 %384, %v405_v47   ;;  %v305_v54 = vmul.f32 %v405_v47, %v503_v23 }
 0x476   :  { %328 = vperm.xlu0 %385, %v407_v48   ;;  %v304_v55 = vmul.f32 %v407_v48, %v501_v22  ;;  %v236_v22 = vrot.slane %v568_v4, 4 }
 0x477   :  { %v307_v41 = vsel %vm85_vm1, %v305_v54, 0.0 }
 0x478   :  { %v306_v60 = vsel %vm85_vm1, %v304_v55, 0.0  ;;  %v237_v3 = vadd.f32 %v236_v22, %v568_v4 }
 0x479   :  { %v308_v23 = vadd.f32 %v307_v41, %v306_v60 }
 0x47a   :  { %v238_v7 = vrot.slane %v237_v3, 2 }
 0x47b   :  { %v309_v5 = vrot.slane %v308_v23, 4 }
 0x47c   :  { %v239_v14 = vadd.f32 %v238_v7, %v237_v3 }
 0x47d   :  { %v310_v9 = vadd.f32 %v309_v5, %v308_v23 }
 0x47e   :  { %v240_v19 = vrot.slane %v239_v14, 1 }
 0x47f   :  { %v311_v16 = vrot.slane %v310_v9, 2 }
 0x480   :  { %v241_v20 = vadd.f32 %v240_v19, %v239_v14 }
 0x481   :  { %v312_v29 = vadd.f32 %v311_v16, %v310_v9 }
 0x483   :  { %v313_v21 = vrot.slane %v312_v29, 1 }
 0x485   :  { %v314_v24 = vadd.f32 %v313_v21, %v312_v29 }
 0x495   :  { %132 = vadd.xlane.f32.xlu0 %v131_v11 }
 0x499   :  { %278 = vadd.xlane.f32.xlu0 %v277_v56  ;;  %205 = vadd.xlane.f32.xlu1 %v204_v57 }
 0x4aa   :  { %172 = vperm.xlu1 %384, %v168_v10  }
 0x4af   :  { %98 = vperm.xlu0 %385, %v94_v18  }
 0x4b3   :  { %245 = vperm.xlu0 %385, %v241_v20  }
 0x4b7   :  { %318 = vperm.xlu0 %385, %v314_v24  }
 0x4f0   :  { %v334_v4 = vpop.permute.xlu1 %333 }
 0x4f1   :  { %v337_v25 = vmul.f32 %v334_v4, %v513_v32  ;;  %v329_v26 = vpop.permute.xlu0 %328 }
 0x4f2   :  { %v336_v27 = vmul.f32 %v329_v26, %v511_v30 }
 0x4f3   :  { %v339_v28 = vsel %vm72_vm0, %v337_v25, 0.0 }
 0x4f4   :  { %v338_v31 = vsel %vm72_vm0, %v336_v27, 0.0 }
 0x4f5   :  { %v340_v33 = vadd.f32 %v339_v28, %v338_v31 }
 0x4f7   :  { %v341_v34 = vrot.slane %v340_v33, 4 }
 0x4f9   :  { %v342_v36 = vadd.f32 %v341_v34, %v340_v33 }
 0x4fb   :  { %v343_v38 = vrot.slane %v342_v36, 2 }
 0x4fd   :  { %v344_v39 = vadd.f32 %v343_v38, %v342_v36 }
 0x4ff   :  { %v345_v43 = vrot.slane %v344_v39, 1 }
 0x501   :  { %v346_v53 = vadd.f32 %v345_v43, %v344_v39 }
 0x503   :  { %v347_v32 = vadd.f32 %v346_v53, %v325_v42 }
 0x505   :  { %408 = vtanh.f32 %v347_v32 }
 0x512   :  { %v409_v44 = vpop.eup %408 }
 0x513   :  { %v349_v30 = vmul.f32 %v409_v44, %v585_v49  ;;  %363 = vst.msk [vmem:[%s627_s3 + $0x1] sm:$0x1] %vm130_vm2, %v409_v44 }
 0x515   :  { %v350_v2 = vsel %vm130_vm2, %v349_v30, 0.0 }
 0x516   :  { %351 = vadd.xlane.f32.xlu1 %v350_v2 }
 0x51e   :  { %v133_v46 = vpop.xlane.xlu0 %132 }
 0x522   :  { %v279_v0 = vpop.xlane.xlu0 %278  ;;  %v206_v48 = vpop.xlane.xlu1 %205 }
 0x526   :  { %v173_v8 = vpop.permute.xlu1 %172 }
 0x527   :  { %358 = vperm.xlu1 %384, %v54_v40  }
 0x52a   :  { %v99_v47 = vpop.permute.xlu0 %98 }
 0x52b   :  { %v101_v12 = vsel %vm95_vm3, %v99_v47, 0.0 }
 0x52c   :  { %v135_v49 = vsel %vm134_vm4, %v133_v46, %v101_v12 }
 0x52d   :  { %v175_v11 = vsel %vm169_vm5, %v173_v8, %v135_v49 }
 0x52e   :  { %v246_v15 = vpop.permute.xlu0 %245  ;;  %v208_v50 = vsel %vm207_vm6, %v206_v48, %v175_v11 }
 0x52f   :  { %v248_v52 = vsel %vm242_vm7, %v246_v15, %v208_v50 }
 0x530   :  { %v281_v51 = vsel %vm280_vm8, %v279_v0, %v248_v52 }
 0x532   :  { %v319_v55 = vpop.permute.xlu0 %318 }
 0x533   :  { %v321_v56 = vsel %vm315_vm9, %v319_v55, %v281_v51 }
 0x59f   :  { %v352_v54 = vpop.xlane.xlu1 %351 }
 0x5a0   :  { %v354_v58 = vsel %vm353_vm10, %v352_v54, %v321_v56 }
 0x5a3   :  { %v359_v57 = vpop.permute.xlu1 %358 }
 0x5a4   :  { %v361_v59 = vadd.f32 %v359_v57, %v354_v58 }
 0x5a6   :  { %362 = vst [vmem:[%s627_s3] sm:$0x1] %v361_v59 }
 0x5a7   :  { %368 = vsyncpa [#allocation3], 1 }
 0x5a8   :  { %369 = vsyncpa [#allocation4], 1 }

</bundles_post_ra>
